<compile_context>
chip_gen: v6e
topology: v6e:2x2x1
jax: 0.10.0
libtpu: 0.0.40
codegen_flags: <defaults>
</compile_context>

<pallas_src>
import functools

import numpy as np
import jax
import jax.numpy as jnp
from jax import lax
from jax.experimental import pallas as pl
from jax.experimental.pallas import tpu as pltpu


_TAPS = tuple((dy, dx) for dy in range(3) for dx in range(3))


def _resblock_kernel(H, W, P, nb, Ci, Co, Cp, use_instance_norm, eps,
                     x_ref, w1_ref, w2_ref, mask_ref, o_ref, stack_ref):
    L = nb * P                         # all nb images stacked along lanes
    w1 = w1_ref[...]                   # (Cp, 9*Cp) bf16
    w2 = w2_ref[...]                   # (Cp, 9*Cp) bf16
    masks = mask_ref[...]              # (9, 1, L) f32, per-image tiled
    inv_p = 1.0 / float(P)

    # Stack the nb images along the lane axis (each image is a 256-lane,
    # vreg-aligned segment) and zero-pad channels to Cp sublanes once in VMEM.
    if nb == 1:
        z0 = x_ref[0]                                         # (Ci, P)
    else:
        z0 = jnp.concatenate([x_ref[i] for i in range(nb)], axis=1)  # (Ci, L)
    if Cp > Ci:
        z0 = jnp.concatenate(
            [z0, jnp.zeros((Cp - Ci, L), jnp.float32)], axis=0)      # (Cp, L)

    def conv3x3(z, w9):
        # Fused 9-tap 3x3 conv (stride 1, pad 1) over ALL nb images at once:
        # each tap is a static lane roll + border mask, written into a reused
        # tile-aligned VMEM scratch, then consumed by ONE MXU matmul
        # (amortizes MXU fill/drain and weight pushes across the batch).
        for t, (dy, dx) in enumerate(_TAPS):
            off = (dy - 1) * W + (dx - 1)
            if off == 0:
                sh = z                                    # center tap: all-ones mask
            else:
                sh = pltpu.roll(z, shift=(-off) % L, axis=1) * masks[t]
            stack_ref[t * Cp:(t + 1) * Cp, :] = sh
        s = stack_ref[...].astype(jnp.bfloat16)           # single MXU pass
        return jnp.dot(w9, s, preferred_element_type=jnp.float32)   # (Cp, L)

    def instance_norm(z):
        # Training-mode InstanceNorm2d: per-(image, channel) spatial mean and
        # biased variance.  Per-image 256-lane slices stay vreg-aligned; sum
        # and sum-of-squares come from one fused cross-lane reduce; rsqrt -> EUP.
        segs = []
        for i in range(nb):
            seg = z[:, i * P:(i + 1) * P]                             # (Cp, P)
            stat = jnp.sum(jnp.concatenate([seg, seg * seg], axis=0),
                           axis=1, keepdims=True)                     # (2Cp, 1)
            mu = stat[:Cp] * inv_p
            var = stat[Cp:] * inv_p - mu * mu
            segs.append((seg - mu) * lax.rsqrt(var + eps))
        if nb == 1:
            return segs[0]
        return jnp.concatenate(segs, axis=1)

    out = conv3x3(z0, w1)
    if use_instance_norm:
        out = instance_norm(out)
    out = jnp.maximum(out, 0.0)
    out = conv3x3(out, w2)
    if use_instance_norm:
        out = instance_norm(out)
    out = jnp.maximum(out + z0, 0.0)                      # residual + relu

    # Per-image, lane-aligned stores of only the first Co (real) channels.
    for i in range(nb):
        o_ref[i] = out[:Co, i * P:(i + 1) * P]


def _tap_masks(H, W, nb):
    """(9, 1, nb*H*W) masks selecting in-bounds source pixels per conv tap,
    tiled per image so the circular lane roll never bleeds across images."""
    yy, xx = np.meshgrid(np.arange(H), np.arange(W), indexing="ij")
    yy = yy.reshape(-1)
    xx = xx.reshape(-1)
    m = []
    for dy, dx in _TAPS:
        vy = yy + dy - 1
        vx = xx + dx - 1
        m.append(((vy >= 0) & (vy < H) & (vx >= 0) & (vx < W)).astype(np.float32))
    m = np.stack(m, axis=0)[:, None, :]        # (9, 1, P)
    return np.tile(m, (1, 1, nb))              # (9, 1, nb*P)


def _pack_weight(w, cp):
    """(Co, Ci, 3, 3) -> channel-pad to cp -> (cp, 9*cp) bf16, tap-major so
    column t*cp + ci matches row t*cp + ci of the in-kernel shift stack."""
    co, ci = w.shape[0], w.shape[1]
    wp = jnp.zeros((cp, cp, 3, 3), jnp.float32).at[:co, :ci].set(
        w.astype(jnp.float32))
    return jnp.transpose(wp, (0, 2, 3, 1)).reshape(cp, 9 * cp).astype(jnp.bfloat16)


def _default_batch_per_step(B):
    # Single-TC v5e/v6e: fold the whole batch into one grid step (no per-step
    # pipeline overhead).  Multi-TC (v7x): one big lane-stacked step per core.
    try:
        n_tc = int(getattr(jax.devices()[0], "num_cores", 1) or 1)
    except Exception:
        n_tc = 1
    n_tc = max(1, min(n_tc, B))
    while B % n_tc:
        n_tc -= 1
    return B // n_tc


def my_resblock_forward(x, conv1_w, conv2_w, *, use_instance_norm=True,
                        eps=1e-5, batch_per_step=None):
    B, Ci, H, W = x.shape
    Co = conv1_w.shape[0]
    assert Ci == Co, "residual add requires in_channels == out_channels"
    P = H * W
    Cp = -(-Ci // 8) * 8                      # channels padded to sublane tile

    if batch_per_step is None:
        batch_per_step = _default_batch_per_step(B)
    nb = batch_per_step
    assert B % nb == 0
    L = nb * P

    # No host-side channel pad: (B, Ci, P) straight into the kernel.
    xp = x.reshape(B, Ci, P).astype(jnp.float32)
    w1_9 = _pack_weight(conv1_w, Cp)
    w2_9 = _pack_weight(conv2_w, Cp)
    masks = jnp.asarray(_tap_masks(H, W, nb))

    kernel = functools.partial(_resblock_kernel, H, W, P, nb, Ci, Co, Cp,
                               use_instance_norm, eps)

    flops = 2 * B * (2 * Cp * (9 * Cp) * P)                     # two MXU convs
    transcendentals = (2 * B * Cp) if use_instance_norm else 0  # rsqrt count
    bytes_accessed = (xp.size * 4 + B * Co * P * 4
                      + (w1_9.size + w2_9.size) * 2 + masks.size * 4)

    out = pl.pallas_call(
        kernel,
        out_shape=jax.ShapeDtypeStruct((B, Co, P), jnp.float32),
        grid_spec=pltpu.PrefetchScalarGridSpec(
            num_scalar_prefetch=0,
            grid=(B // nb,),
            in_specs=[
                pl.BlockSpec((nb, Ci, P), lambda b: (b, 0, 0)),
                pl.BlockSpec((Cp, 9 * Cp), lambda b: (0, 0)),
                pl.BlockSpec((Cp, 9 * Cp), lambda b: (0, 0)),
                pl.BlockSpec((9, 1, L), lambda b: (0, 0, 0)),
            ],
            out_specs=pl.BlockSpec((nb, Co, P), lambda b: (b, 0, 0)),
            scratch_shapes=[pltpu.VMEM((9 * Cp, L), jnp.float32)],
        ),
        compiler_params=pltpu.CompilerParams(
            dimension_semantics=("parallel",)),
        cost_estimate=pl.CostEstimate(flops=flops,
                                      transcendentals=transcendentals,
                                      bytes_accessed=bytes_accessed),
    )(xp, w1_9, w2_9, masks)

    return out.reshape(B, Co, H, W)


def _resblock_reference(x, w1, w2, use_instance_norm=True, eps=1e-5):
    """Pure-JAX reference of the PyTorch forward (high-precision convs)."""
    dn = lax.conv_dimension_numbers(x.shape, w1.shape, ("NCHW", "OIHW", "NCHW"))

    def conv(z, w):
        return lax.conv_general_dilated(z, w, (1, 1), ((1, 1), (1, 1)),
                                        dimension_numbers=dn,
                                        precision=lax.Precision.HIGHEST)

    def inorm(z):
        mu = jnp.mean(z, axis=(2, 3), keepdims=True)
        var = jnp.mean((z - mu) ** 2, axis=(2, 3), keepdims=True)
        return (z - mu) / jnp.sqrt(var + eps)

    out = conv(x, w1)
    if use_instance_norm:
        out = inorm(out)
    out = jnp.maximum(out, 0.0)
    out = conv(out, w2)
    if use_instance_norm:
        out = inorm(out)
    return jnp.maximum(out + x, 0.0)


if __name__ == "__main__":
    key = jax.random.PRNGKey(0)
    B, C, H, W = 2, 4, 16, 16
    k1, k2, k3 = jax.random.split(key, 3)
    x = jax.random.normal(k1, (B, C, H, W), jnp.float32)
    scale = 1.0 / np.sqrt(9 * C)
    w1 = jax.random.normal(k2, (C, C, 3, 3), jnp.float32) * scale
    w2 = jax.random.normal(k3, (C, C, 3, 3), jnp.float32) * scale

    out = jax.block_until_ready(my_resblock_forward(x, w1, w2))

    ref = jax.block_until_ready(_resblock_reference(x, w1, w2))
    # Tolerance accounts for explicit bf16 MXU operands inside the kernel vs.
    # the HIGHEST-precision XLA reference convolutions.
    np.testing.assert_allclose(np.asarray(out), np.asarray(ref),
                               rtol=2e-2, atol=2e-2)
    print("KERNEL_OK")
</pallas_src>

<mosaic_0001>
module attributes {stable_mosaic.version = 11 : i64} {
  func.func @_resblock_kernel(%arg0: i32, %arg1: memref<2x4x256xf32, #tpu.memory_space<vmem>>, %arg2: memref<8x72xbf16, #tpu.memory_space<vmem>>, %arg3: memref<8x72xbf16, #tpu.memory_space<vmem>>, %arg4: memref<9x1x512xf32, #tpu.memory_space<vmem>>, %arg5: memref<2x4x256xf32, #tpu.memory_space<vmem>>, %arg6: memref<72x512xf32, #tpu.memory_space<vmem>>) attributes {dimension_semantics = [#tpu.dimension_semantics<parallel>], iteration_bounds = array<i64: 1>, scalar_prefetch = 0 : i64, scratch_operands = 1 : i64, tpu.core_type = #tpu.core_type<tc>, window_params = [{transform_indices = @transform_0, window_bounds = array<i64: 2, 4, 256>}, {pipeline_mode = #tpu.pipeline_mode<synchronous>, transform_indices = @transform_1, window_bounds = array<i64: 8, 72>}, {pipeline_mode = #tpu.pipeline_mode<synchronous>, transform_indices = @transform_2, window_bounds = array<i64: 8, 72>}, {pipeline_mode = #tpu.pipeline_mode<synchronous>, transform_indices = @transform_3, window_bounds = array<i64: 9, 1, 512>}, {transform_indices = @transform_4, window_bounds = array<i64: 2, 4, 256>}]} {
    %c0 = arith.constant 0 : index
    %c0_0 = arith.constant 0 : index
    %0 = vector.load %arg2[%c0, %c0_0] : memref<8x72xbf16, #tpu.memory_space<vmem>>, vector<8x72xbf16>
    %c0_1 = arith.constant 0 : index
    %c0_2 = arith.constant 0 : index
    %1 = vector.load %arg3[%c0_1, %c0_2] : memref<8x72xbf16, #tpu.memory_space<vmem>>, vector<8x72xbf16>
    %c0_3 = arith.constant 0 : index
    %c0_4 = arith.constant 0 : index
    %c0_5 = arith.constant 0 : index
    %2 = vector.load %arg4[%c0_3, %c0_4, %c0_5] : memref<9x1x512xf32, #tpu.memory_space<vmem>>, vector<9x1x512xf32>
    %c0_6 = arith.constant 0 : index
    %c0_7 = arith.constant 0 : index
    %c0_8 = arith.constant 0 : index
    %3 = vector.load %arg1[%c0_6, %c0_7, %c0_8] : memref<2x4x256xf32, #tpu.memory_space<vmem>>, vector<1x4x256xf32>
    %4 = vector.shape_cast %3 : vector<1x4x256xf32> to vector<4x256xf32>
    %c1 = arith.constant 1 : index
    %c0_9 = arith.constant 0 : index
    %c0_10 = arith.constant 0 : index
    %5 = vector.load %arg1[%c1, %c0_9, %c0_10] : memref<2x4x256xf32, #tpu.memory_space<vmem>>, vector<1x4x256xf32>
    %6 = vector.shape_cast %5 : vector<1x4x256xf32> to vector<4x256xf32>
    %7 = tpu.concatenate %4, %6 in 1 : vector<4x256xf32>, vector<4x256xf32> -> vector<4x512xf32>
    %cst = arith.constant 0.000000e+00 : f32
    %8 = vector.broadcast %cst : f32 to vector<4x512xf32>
    %9 = tpu.concatenate %7, %8 in 0 : vector<4x512xf32>, vector<4x512xf32> -> vector<8x512xf32>
    %c17_i32 = arith.constant 17 : i32
    %10 = tpu.dynamic_rotate %9 by %c17_i32 dim 1 : vector<8x512xf32>, i32 -> vector<8x512xf32>
    %11 = vector.extract_strided_slice %2 {offsets = [0, 0, 0], sizes = [1, 1, 512], strides = [1, 1, 1]} : vector<9x1x512xf32> to vector<1x1x512xf32>
    %12 = vector.shape_cast %11 : vector<1x1x512xf32> to vector<1x512xf32>
    %13 = vector.broadcast %12 : vector<1x512xf32> to vector<8x512xf32>
    %14 = arith.mulf %10, %13 : vector<8x512xf32>
    %c0_11 = arith.constant 0 : index
    %c0_12 = arith.constant 0 : index
    %15 = vector.load %arg6[%c0_11, %c0_12] : memref<72x512xf32, #tpu.memory_space<vmem>>, vector<8x512xf32>
    tpu.vector_store %arg6[%c0_11, %c0_12], %14 {strides = array<i32>} : memref<72x512xf32, #tpu.memory_space<vmem>>, vector<8x512xf32>,
    %c16_i32 = arith.constant 16 : i32
    %16 = tpu.dynamic_rotate %9 by %c16_i32 dim 1 : vector<8x512xf32>, i32 -> vector<8x512xf32>
    %17 = vector.extract_strided_slice %2 {offsets = [1, 0, 0], sizes = [1, 1, 512], strides = [1, 1, 1]} : vector<9x1x512xf32> to vector<1x1x512xf32>
    %18 = vector.shape_cast %17 : vector<1x1x512xf32> to vector<1x512xf32>
    %19 = vector.broadcast %18 : vector<1x512xf32> to vector<8x512xf32>
    %20 = arith.mulf %16, %19 : vector<8x512xf32>
    %c8 = arith.constant 8 : index
    %c0_13 = arith.constant 0 : index
    %21 = vector.load %arg6[%c8, %c0_13] : memref<72x512xf32, #tpu.memory_space<vmem>>, vector<8x512xf32>
    tpu.vector_store %arg6[%c8, %c0_13], %20 {strides = array<i32>} : memref<72x512xf32, #tpu.memory_space<vmem>>, vector<8x512xf32>,
    %c15_i32 = arith.constant 15 : i32
    %22 = tpu.dynamic_rotate %9 by %c15_i32 dim 1 : vector<8x512xf32>, i32 -> vector<8x512xf32>
    %23 = vector.extract_strided_slice %2 {offsets = [2, 0, 0], sizes = [1, 1, 512], strides = [1, 1, 1]} : vector<9x1x512xf32> to vector<1x1x512xf32>
    %24 = vector.shape_cast %23 : vector<1x1x512xf32> to vector<1x512xf32>
    %25 = vector.broadcast %24 : vector<1x512xf32> to vector<8x512xf32>
    %26 = arith.mulf %22, %25 : vector<8x512xf32>
    %c16 = arith.constant 16 : index
    %c0_14 = arith.constant 0 : index
    %27 = vector.load %arg6[%c16, %c0_14] : memref<72x512xf32, #tpu.memory_space<vmem>>, vector<8x512xf32>
    tpu.vector_store %arg6[%c16, %c0_14], %26 {strides = array<i32>} : memref<72x512xf32, #tpu.memory_space<vmem>>, vector<8x512xf32>,
    %c1_i32 = arith.constant 1 : i32
    %28 = tpu.dynamic_rotate %9 by %c1_i32 dim 1 : vector<8x512xf32>, i32 -> vector<8x512xf32>
    %29 = vector.extract_strided_slice %2 {offsets = [3, 0, 0], sizes = [1, 1, 512], strides = [1, 1, 1]} : vector<9x1x512xf32> to vector<1x1x512xf32>
    %30 = vector.shape_cast %29 : vector<1x1x512xf32> to vector<1x512xf32>
    %31 = vector.broadcast %30 : vector<1x512xf32> to vector<8x512xf32>
    %32 = arith.mulf %28, %31 : vector<8x512xf32>
    %c24 = arith.constant 24 : index
    %c0_15 = arith.constant 0 : index
    %33 = vector.load %arg6[%c24, %c0_15] : memref<72x512xf32, #tpu.memory_space<vmem>>, vector<8x512xf32>
    tpu.vector_store %arg6[%c24, %c0_15], %32 {strides = array<i32>} : memref<72x512xf32, #tpu.memory_space<vmem>>, vector<8x512xf32>,
    %c32 = arith.constant 32 : index
    %c0_16 = arith.constant 0 : index
    %34 = vector.load %arg6[%c32, %c0_16] : memref<72x512xf32, #tpu.memory_space<vmem>>, vector<8x512xf32>
    tpu.vector_store %arg6[%c32, %c0_16], %9 {strides = array<i32>} : memref<72x512xf32, #tpu.memory_space<vmem>>, vector<8x512xf32>,
    %c511_i32 = arith.constant 511 : i32
    %35 = tpu.dynamic_rotate %9 by %c511_i32 dim 1 : vector<8x512xf32>, i32 -> vector<8x512xf32>
    %36 = vector.extract_strided_slice %2 {offsets = [5, 0, 0], sizes = [1, 1, 512], strides = [1, 1, 1]} : vector<9x1x512xf32> to vector<1x1x512xf32>
    %37 = vector.shape_cast %36 : vector<1x1x512xf32> to vector<1x512xf32>
    %38 = vector.broadcast %37 : vector<1x512xf32> to vector<8x512xf32>
    %39 = arith.mulf %35, %38 : vector<8x512xf32>
    %c40 = arith.constant 40 : index
    %c0_17 = arith.constant 0 : index
    %40 = vector.load %arg6[%c40, %c0_17] : memref<72x512xf32, #tpu.memory_space<vmem>>, vector<8x512xf32>
    tpu.vector_store %arg6[%c40, %c0_17], %39 {strides = array<i32>} : memref<72x512xf32, #tpu.memory_space<vmem>>, vector<8x512xf32>,
    %c497_i32 = arith.constant 497 : i32
    %41 = tpu.dynamic_rotate %9 by %c497_i32 dim 1 : vector<8x512xf32>, i32 -> vector<8x512xf32>
    %42 = vector.extract_strided_slice %2 {offsets = [6, 0, 0], sizes = [1, 1, 512], strides = [1, 1, 1]} : vector<9x1x512xf32> to vector<1x1x512xf32>
    %43 = vector.shape_cast %42 : vector<1x1x512xf32> to vector<1x512xf32>
    %44 = vector.broadcast %43 : vector<1x512xf32> to vector<8x512xf32>
    %45 = arith.mulf %41, %44 : vector<8x512xf32>
    %c48 = arith.constant 48 : index
    %c0_18 = arith.constant 0 : index
    %46 = vector.load %arg6[%c48, %c0_18] : memref<72x512xf32, #tpu.memory_space<vmem>>, vector<8x512xf32>
    tpu.vector_store %arg6[%c48, %c0_18], %45 {strides = array<i32>} : memref<72x512xf32, #tpu.memory_space<vmem>>, vector<8x512xf32>,
    %c496_i32 = arith.constant 496 : i32
    %47 = tpu.dynamic_rotate %9 by %c496_i32 dim 1 : vector<8x512xf32>, i32 -> vector<8x512xf32>
    %48 = vector.extract_strided_slice %2 {offsets = [7, 0, 0], sizes = [1, 1, 512], strides = [1, 1, 1]} : vector<9x1x512xf32> to vector<1x1x512xf32>
    %49 = vector.shape_cast %48 : vector<1x1x512xf32> to vector<1x512xf32>
    %50 = vector.broadcast %49 : vector<1x512xf32> to vector<8x512xf32>
    %51 = arith.mulf %47, %50 : vector<8x512xf32>
    %c56 = arith.constant 56 : index
    %c0_19 = arith.constant 0 : index
    %52 = vector.load %arg6[%c56, %c0_19] : memref<72x512xf32, #tpu.memory_space<vmem>>, vector<8x512xf32>
    tpu.vector_store %arg6[%c56, %c0_19], %51 {strides = array<i32>} : memref<72x512xf32, #tpu.memory_space<vmem>>, vector<8x512xf32>,
    %c495_i32 = arith.constant 495 : i32
    %53 = tpu.dynamic_rotate %9 by %c495_i32 dim 1 : vector<8x512xf32>, i32 -> vector<8x512xf32>
    %54 = vector.extract_strided_slice %2 {offsets = [8, 0, 0], sizes = [1, 1, 512], strides = [1, 1, 1]} : vector<9x1x512xf32> to vector<1x1x512xf32>
    %55 = vector.shape_cast %54 : vector<1x1x512xf32> to vector<1x512xf32>
    %56 = vector.broadcast %55 : vector<1x512xf32> to vector<8x512xf32>
    %57 = arith.mulf %53, %56 : vector<8x512xf32>
    %c64 = arith.constant 64 : index
    %c0_20 = arith.constant 0 : index
    %58 = vector.load %arg6[%c64, %c0_20] : memref<72x512xf32, #tpu.memory_space<vmem>>, vector<8x512xf32>
    tpu.vector_store %arg6[%c64, %c0_20], %57 {strides = array<i32>} : memref<72x512xf32, #tpu.memory_space<vmem>>, vector<8x512xf32>,
    %c0_21 = arith.constant 0 : index
    %c0_22 = arith.constant 0 : index
    %59 = vector.load %arg6[%c0_21, %c0_22] : memref<72x512xf32, #tpu.memory_space<vmem>>, vector<72x512xf32>
    %60 = arith.truncf %59 : vector<72x512xf32> to vector<72x512xbf16>
    %cst_23 = arith.constant dense<0.000000e+00> : vector<8x512xf32>
    %61 = tpu.matmul %0, %60, %cst_23 {dimension_numbers = #tpu.dot_dimension_numbers<[1], [0], [0], [1], [0, 0, 1, 1], [], []>} : vector<8x72xbf16>, vector<72x512xbf16>, vector<8x512xf32> -> vector<8x512xf32>
    %62 = vector.extract_strided_slice %61 {offsets = [0, 0], sizes = [8, 256], strides = [1, 1]} : vector<8x512xf32> to vector<8x256xf32>
    %63 = arith.mulf %62, %62 : vector<8x256xf32>
    %64 = tpu.concatenate %62, %63 in 0 : vector<8x256xf32>, vector<8x256xf32> -> vector<16x256xf32>
    %cst_24 = arith.constant dense<0.000000e+00> : vector<16xf32>
    %65 = vector.multi_reduction <add>, %64, %cst_24 [1] : vector<16x256xf32> to vector<16xf32>
    %66 = vector.shape_cast %65 : vector<16xf32> to vector<16x1xf32>
    %67 = vector.extract_strided_slice %66 {offsets = [0, 0], sizes = [8, 1], strides = [1, 1]} : vector<16x1xf32> to vector<8x1xf32>
    %cst_25 = arith.constant 3.906250e-03 : f32
    %68 = vector.broadcast %cst_25 : f32 to vector<8x1xf32>
    %69 = arith.mulf %67, %68 : vector<8x1xf32>
    %70 = vector.extract_strided_slice %66 {offsets = [8, 0], sizes = [8, 1], strides = [1, 1]} : vector<16x1xf32> to vector<8x1xf32>
    %cst_26 = arith.constant 3.906250e-03 : f32
    %71 = vector.broadcast %cst_26 : f32 to vector<8x1xf32>
    %72 = arith.mulf %70, %71 : vector<8x1xf32>
    %73 = arith.mulf %69, %69 : vector<8x1xf32>
    %74 = arith.subf %72, %73 : vector<8x1xf32>
    %75 = vector.broadcast %69 : vector<8x1xf32> to vector<8x256xf32>
    %76 = arith.subf %62, %75 : vector<8x256xf32>
    %cst_27 = arith.constant 9.99999974E-6 : f32
    %77 = vector.broadcast %cst_27 : f32 to vector<8x1xf32>
    %78 = arith.addf %74, %77 : vector<8x1xf32>
    %79 = math.rsqrt %78 : vector<8x1xf32>
    %80 = vector.broadcast %79 : vector<8x1xf32> to vector<8x256xf32>
    %81 = arith.mulf %76, %80 : vector<8x256xf32>
    %82 = vector.extract_strided_slice %61 {offsets = [0, 256], sizes = [8, 256], strides = [1, 1]} : vector<8x512xf32> to vector<8x256xf32>
    %83 = arith.mulf %82, %82 : vector<8x256xf32>
    %84 = tpu.concatenate %82, %83 in 0 : vector<8x256xf32>, vector<8x256xf32> -> vector<16x256xf32>
    %cst_28 = arith.constant dense<0.000000e+00> : vector<16xf32>
    %85 = vector.multi_reduction <add>, %84, %cst_28 [1] : vector<16x256xf32> to vector<16xf32>
    %86 = vector.shape_cast %85 : vector<16xf32> to vector<16x1xf32>
    %87 = vector.extract_strided_slice %86 {offsets = [0, 0], sizes = [8, 1], strides = [1, 1]} : vector<16x1xf32> to vector<8x1xf32>
    %cst_29 = arith.constant 3.906250e-03 : f32
    %88 = vector.broadcast %cst_29 : f32 to vector<8x1xf32>
    %89 = arith.mulf %87, %88 : vector<8x1xf32>
    %90 = vector.extract_strided_slice %86 {offsets = [8, 0], sizes = [8, 1], strides = [1, 1]} : vector<16x1xf32> to vector<8x1xf32>
    %cst_30 = arith.constant 3.906250e-03 : f32
    %91 = vector.broadcast %cst_30 : f32 to vector<8x1xf32>
    %92 = arith.mulf %90, %91 : vector<8x1xf32>
    %93 = arith.mulf %89, %89 : vector<8x1xf32>
    %94 = arith.subf %92, %93 : vector<8x1xf32>
    %95 = vector.broadcast %89 : vector<8x1xf32> to vector<8x256xf32>
    %96 = arith.subf %82, %95 : vector<8x256xf32>
    %cst_31 = arith.constant 9.99999974E-6 : f32
    %97 = vector.broadcast %cst_31 : f32 to vector<8x1xf32>
    %98 = arith.addf %94, %97 : vector<8x1xf32>
    %99 = math.rsqrt %98 : vector<8x1xf32>
    %100 = vector.broadcast %99 : vector<8x1xf32> to vector<8x256xf32>
    %101 = arith.mulf %96, %100 : vector<8x256xf32>
    %102 = tpu.concatenate %81, %101 in 1 : vector<8x256xf32>, vector<8x256xf32> -> vector<8x512xf32>
    %cst_32 = arith.constant 0.000000e+00 : f32
    %103 = vector.broadcast %cst_32 : f32 to vector<8x512xf32>
    %104 = arith.maximumf %102, %103 : vector<8x512xf32>
    %c17_i32_33 = arith.constant 17 : i32
    %105 = tpu.dynamic_rotate %104 by %c17_i32_33 dim 1 : vector<8x512xf32>, i32 -> vector<8x512xf32>
    %106 = vector.extract_strided_slice %2 {offsets = [0, 0, 0], sizes = [1, 1, 512], strides = [1, 1, 1]} : vector<9x1x512xf32> to vector<1x1x512xf32>
    %107 = vector.shape_cast %106 : vector<1x1x512xf32> to vector<1x512xf32>
    %108 = vector.broadcast %107 : vector<1x512xf32> to vector<8x512xf32>
    %109 = arith.mulf %105, %108 : vector<8x512xf32>
    %c0_34 = arith.constant 0 : index
    %c0_35 = arith.constant 0 : index
    %110 = vector.load %arg6[%c0_34, %c0_35] : memref<72x512xf32, #tpu.memory_space<vmem>>, vector<8x512xf32>
    tpu.vector_store %arg6[%c0_34, %c0_35], %109 {strides = array<i32>} : memref<72x512xf32, #tpu.memory_space<vmem>>, vector<8x512xf32>,
    %c16_i32_36 = arith.constant 16 : i32
    %111 = tpu.dynamic_rotate %104 by %c16_i32_36 dim 1 : vector<8x512xf32>, i32 -> vector<8x512xf32>
    %112 = vector.extract_strided_slice %2 {offsets = [1, 0, 0], sizes = [1, 1, 512], strides = [1, 1, 1]} : vector<9x1x512xf32> to vector<1x1x512xf32>
    %113 = vector.shape_cast %112 : vector<1x1x512xf32> to vector<1x512xf32>
    %114 = vector.broadcast %113 : vector<1x512xf32> to vector<8x512xf32>
    %115 = arith.mulf %111, %114 : vector<8x512xf32>
    %c8_37 = arith.constant 8 : index
    %c0_38 = arith.constant 0 : index
    %116 = vector.load %arg6[%c8_37, %c0_38] : memref<72x512xf32, #tpu.memory_space<vmem>>, vector<8x512xf32>
    tpu.vector_store %arg6[%c8_37, %c0_38], %115 {strides = array<i32>} : memref<72x512xf32, #tpu.memory_space<vmem>>, vector<8x512xf32>,
    %c15_i32_39 = arith.constant 15 : i32
    %117 = tpu.dynamic_rotate %104 by %c15_i32_39 dim 1 : vector<8x512xf32>, i32 -> vector<8x512xf32>
    %118 = vector.extract_strided_slice %2 {offsets = [2, 0, 0], sizes = [1, 1, 512], strides = [1, 1, 1]} : vector<9x1x512xf32> to vector<1x1x512xf32>
    %119 = vector.shape_cast %118 : vector<1x1x512xf32> to vector<1x512xf32>
    %120 = vector.broadcast %119 : vector<1x512xf32> to vector<8x512xf32>
    %121 = arith.mulf %117, %120 : vector<8x512xf32>
    %c16_40 = arith.constant 16 : index
    %c0_41 = arith.constant 0 : index
    %122 = vector.load %arg6[%c16_40, %c0_41] : memref<72x512xf32, #tpu.memory_space<vmem>>, vector<8x512xf32>
    tpu.vector_store %arg6[%c16_40, %c0_41], %121 {strides = array<i32>} : memref<72x512xf32, #tpu.memory_space<vmem>>, vector<8x512xf32>,
    %c1_i32_42 = arith.constant 1 : i32
    %123 = tpu.dynamic_rotate %104 by %c1_i32_42 dim 1 : vector<8x512xf32>, i32 -> vector<8x512xf32>
    %124 = vector.extract_strided_slice %2 {offsets = [3, 0, 0], sizes = [1, 1, 512], strides = [1, 1, 1]} : vector<9x1x512xf32> to vector<1x1x512xf32>
    %125 = vector.shape_cast %124 : vector<1x1x512xf32> to vector<1x512xf32>
    %126 = vector.broadcast %125 : vector<1x512xf32> to vector<8x512xf32>
    %127 = arith.mulf %123, %126 : vector<8x512xf32>
    %c24_43 = arith.constant 24 : index
    %c0_44 = arith.constant 0 : index
    %128 = vector.load %arg6[%c24_43, %c0_44] : memref<72x512xf32, #tpu.memory_space<vmem>>, vector<8x512xf32>
    tpu.vector_store %arg6[%c24_43, %c0_44], %127 {strides = array<i32>} : memref<72x512xf32, #tpu.memory_space<vmem>>, vector<8x512xf32>,
    %c32_45 = arith.constant 32 : index
    %c0_46 = arith.constant 0 : index
    %129 = vector.load %arg6[%c32_45, %c0_46] : memref<72x512xf32, #tpu.memory_space<vmem>>, vector<8x512xf32>
    tpu.vector_store %arg6[%c32_45, %c0_46], %104 {strides = array<i32>} : memref<72x512xf32, #tpu.memory_space<vmem>>, vector<8x512xf32>,
    %c511_i32_47 = arith.constant 511 : i32
    %130 = tpu.dynamic_rotate %104 by %c511_i32_47 dim 1 : vector<8x512xf32>, i32 -> vector<8x512xf32>
    %131 = vector.extract_strided_slice %2 {offsets = [5, 0, 0], sizes = [1, 1, 512], strides = [1, 1, 1]} : vector<9x1x512xf32> to vector<1x1x512xf32>
    %132 = vector.shape_cast %131 : vector<1x1x512xf32> to vector<1x512xf32>
    %133 = vector.broadcast %132 : vector<1x512xf32> to vector<8x512xf32>
    %134 = arith.mulf %130, %133 : vector<8x512xf32>
    %c40_48 = arith.constant 40 : index
    %c0_49 = arith.constant 0 : index
    %135 = vector.load %arg6[%c40_48, %c0_49] : memref<72x512xf32, #tpu.memory_space<vmem>>, vector<8x512xf32>
    tpu.vector_store %arg6[%c40_48, %c0_49], %134 {strides = array<i32>} : memref<72x512xf32, #tpu.memory_space<vmem>>, vector<8x512xf32>,
    %c497_i32_50 = arith.constant 497 : i32
    %136 = tpu.dynamic_rotate %104 by %c497_i32_50 dim 1 : vector<8x512xf32>, i32 -> vector<8x512xf32>
    %137 = vector.extract_strided_slice %2 {offsets = [6, 0, 0], sizes = [1, 1, 512], strides = [1, 1, 1]} : vector<9x1x512xf32> to vector<1x1x512xf32>
    %138 = vector.shape_cast %137 : vector<1x1x512xf32> to vector<1x512xf32>
    %139 = vector.broadcast %138 : vector<1x512xf32> to vector<8x512xf32>
    %140 = arith.mulf %136, %139 : vector<8x512xf32>
    %c48_51 = arith.constant 48 : index
    %c0_52 = arith.constant 0 : index
    %141 = vector.load %arg6[%c48_51, %c0_52] : memref<72x512xf32, #tpu.memory_space<vmem>>, vector<8x512xf32>
    tpu.vector_store %arg6[%c48_51, %c0_52], %140 {strides = array<i32>} : memref<72x512xf32, #tpu.memory_space<vmem>>, vector<8x512xf32>,
    %c496_i32_53 = arith.constant 496 : i32
    %142 = tpu.dynamic_rotate %104 by %c496_i32_53 dim 1 : vector<8x512xf32>, i32 -> vector<8x512xf32>
    %143 = vector.extract_strided_slice %2 {offsets = [7, 0, 0], sizes = [1, 1, 512], strides = [1, 1, 1]} : vector<9x1x512xf32> to vector<1x1x512xf32>
    %144 = vector.shape_cast %143 : vector<1x1x512xf32> to vector<1x512xf32>
    %145 = vector.broadcast %144 : vector<1x512xf32> to vector<8x512xf32>
    %146 = arith.mulf %142, %145 : vector<8x512xf32>
    %c56_54 = arith.constant 56 : index
    %c0_55 = arith.constant 0 : index
    %147 = vector.load %arg6[%c56_54, %c0_55] : memref<72x512xf32, #tpu.memory_space<vmem>>, vector<8x512xf32>
    tpu.vector_store %arg6[%c56_54, %c0_55], %146 {strides = array<i32>} : memref<72x512xf32, #tpu.memory_space<vmem>>, vector<8x512xf32>,
    %c495_i32_56 = arith.constant 495 : i32
    %148 = tpu.dynamic_rotate %104 by %c495_i32_56 dim 1 : vector<8x512xf32>, i32 -> vector<8x512xf32>
    %149 = vector.extract_strided_slice %2 {offsets = [8, 0, 0], sizes = [1, 1, 512], strides = [1, 1, 1]} : vector<9x1x512xf32> to vector<1x1x512xf32>
    %150 = vector.shape_cast %149 : vector<1x1x512xf32> to vector<1x512xf32>
    %151 = vector.broadcast %150 : vector<1x512xf32> to vector<8x512xf32>
    %152 = arith.mulf %148, %151 : vector<8x512xf32>
    %c64_57 = arith.constant 64 : index
    %c0_58 = arith.constant 0 : index
    %153 = vector.load %arg6[%c64_57, %c0_58] : memref<72x512xf32, #tpu.memory_space<vmem>>, vector<8x512xf32>
    tpu.vector_store %arg6[%c64_57, %c0_58], %152 {strides = array<i32>} : memref<72x512xf32, #tpu.memory_space<vmem>>, vector<8x512xf32>,
    %c0_59 = arith.constant 0 : index
    %c0_60 = arith.constant 0 : index
    %154 = vector.load %arg6[%c0_59, %c0_60] : memref<72x512xf32, #tpu.memory_space<vmem>>, vector<72x512xf32>
    %155 = arith.truncf %154 : vector<72x512xf32> to vector<72x512xbf16>
    %cst_61 = arith.constant dense<0.000000e+00> : vector<8x512xf32>
    %156 = tpu.matmul %1, %155, %cst_61 {dimension_numbers = #tpu.dot_dimension_numbers<[1], [0], [0], [1], [0, 0, 1, 1], [], []>} : vector<8x72xbf16>, vector<72x512xbf16>, vector<8x512xf32> -> vector<8x512xf32>
    %157 = vector.extract_strided_slice %156 {offsets = [0, 0], sizes = [8, 256], strides = [1, 1]} : vector<8x512xf32> to vector<8x256xf32>
    %158 = arith.mulf %157, %157 : vector<8x256xf32>
    %159 = tpu.concatenate %157, %158 in 0 : vector<8x256xf32>, vector<8x256xf32> -> vector<16x256xf32>
    %cst_62 = arith.constant dense<0.000000e+00> : vector<16xf32>
    %160 = vector.multi_reduction <add>, %159, %cst_62 [1] : vector<16x256xf32> to vector<16xf32>
    %161 = vector.shape_cast %160 : vector<16xf32> to vector<16x1xf32>
    %162 = vector.extract_strided_slice %161 {offsets = [0, 0], sizes = [8, 1], strides = [1, 1]} : vector<16x1xf32> to vector<8x1xf32>
    %cst_63 = arith.constant 3.906250e-03 : f32
    %163 = vector.broadcast %cst_63 : f32 to vector<8x1xf32>
    %164 = arith.mulf %162, %163 : vector<8x1xf32>
    %165 = vector.extract_strided_slice %161 {offsets = [8, 0], sizes = [8, 1], strides = [1, 1]} : vector<16x1xf32> to vector<8x1xf32>
    %cst_64 = arith.constant 3.906250e-03 : f32
    %166 = vector.broadcast %cst_64 : f32 to vector<8x1xf32>
    %167 = arith.mulf %165, %166 : vector<8x1xf32>
    %168 = arith.mulf %164, %164 : vector<8x1xf32>
    %169 = arith.subf %167, %168 : vector<8x1xf32>
    %170 = vector.broadcast %164 : vector<8x1xf32> to vector<8x256xf32>
    %171 = arith.subf %157, %170 : vector<8x256xf32>
    %cst_65 = arith.constant 9.99999974E-6 : f32
    %172 = vector.broadcast %cst_65 : f32 to vector<8x1xf32>
    %173 = arith.addf %169, %172 : vector<8x1xf32>
    %174 = math.rsqrt %173 : vector<8x1xf32>
    %175 = vector.broadcast %174 : vector<8x1xf32> to vector<8x256xf32>
    %176 = arith.mulf %171, %175 : vector<8x256xf32>
    %177 = vector.extract_strided_slice %156 {offsets = [0, 256], sizes = [8, 256], strides = [1, 1]} : vector<8x512xf32> to vector<8x256xf32>
    %178 = arith.mulf %177, %177 : vector<8x256xf32>
    %179 = tpu.concatenate %177, %178 in 0 : vector<8x256xf32>, vector<8x256xf32> -> vector<16x256xf32>
    %cst_66 = arith.constant dense<0.000000e+00> : vector<16xf32>
    %180 = vector.multi_reduction <add>, %179, %cst_66 [1] : vector<16x256xf32> to vector<16xf32>
    %181 = vector.shape_cast %180 : vector<16xf32> to vector<16x1xf32>
    %182 = vector.extract_strided_slice %181 {offsets = [0, 0], sizes = [8, 1], strides = [1, 1]} : vector<16x1xf32> to vector<8x1xf32>
    %cst_67 = arith.constant 3.906250e-03 : f32
    %183 = vector.broadcast %cst_67 : f32 to vector<8x1xf32>
    %184 = arith.mulf %182, %183 : vector<8x1xf32>
    %185 = vector.extract_strided_slice %181 {offsets = [8, 0], sizes = [8, 1], strides = [1, 1]} : vector<16x1xf32> to vector<8x1xf32>
    %cst_68 = arith.constant 3.906250e-03 : f32
    %186 = vector.broadcast %cst_68 : f32 to vector<8x1xf32>
    %187 = arith.mulf %185, %186 : vector<8x1xf32>
    %188 = arith.mulf %184, %184 : vector<8x1xf32>
    %189 = arith.subf %187, %188 : vector<8x1xf32>
    %190 = vector.broadcast %184 : vector<8x1xf32> to vector<8x256xf32>
    %191 = arith.subf %177, %190 : vector<8x256xf32>
    %cst_69 = arith.constant 9.99999974E-6 : f32
    %192 = vector.broadcast %cst_69 : f32 to vector<8x1xf32>
    %193 = arith.addf %189, %192 : vector<8x1xf32>
    %194 = math.rsqrt %193 : vector<8x1xf32>
    %195 = vector.broadcast %194 : vector<8x1xf32> to vector<8x256xf32>
    %196 = arith.mulf %191, %195 : vector<8x256xf32>
    %197 = tpu.concatenate %176, %196 in 1 : vector<8x256xf32>, vector<8x256xf32> -> vector<8x512xf32>
    %198 = arith.addf %197, %9 : vector<8x512xf32>
    %cst_70 = arith.constant 0.000000e+00 : f32
    %199 = vector.broadcast %cst_70 : f32 to vector<8x512xf32>
    %200 = arith.maximumf %198, %199 : vector<8x512xf32>
    %201 = vector.extract_strided_slice %200 {offsets = [0, 0], sizes = [4, 256], strides = [1, 1]} : vector<8x512xf32> to vector<4x256xf32>
    %c0_71 = arith.constant 0 : index
    %c0_72 = arith.constant 0 : index
    %c0_73 = arith.constant 0 : index
    %202 = vector.load %arg5[%c0_71, %c0_72, %c0_73] : memref<2x4x256xf32, #tpu.memory_space<vmem>>, vector<1x4x256xf32>
    %203 = vector.shape_cast %202 : vector<1x4x256xf32> to vector<4x256xf32>
    %204 = vector.shape_cast %201 : vector<4x256xf32> to vector<1x4x256xf32>
    tpu.vector_store %arg5[%c0_71, %c0_72, %c0_73], %204 {strides = array<i32>} : memref<2x4x256xf32, #tpu.memory_space<vmem>>, vector<1x4x256xf32>,
    %205 = vector.extract_strided_slice %200 {offsets = [0, 256], sizes = [4, 256], strides = [1, 1]} : vector<8x512xf32> to vector<4x256xf32>
    %c1_74 = arith.constant 1 : index
    %c0_75 = arith.constant 0 : index
    %c0_76 = arith.constant 0 : index
    %206 = vector.load %arg5[%c1_74, %c0_75, %c0_76] : memref<2x4x256xf32, #tpu.memory_space<vmem>>, vector<1x4x256xf32>
    %207 = vector.shape_cast %206 : vector<1x4x256xf32> to vector<4x256xf32>
    %208 = vector.shape_cast %205 : vector<4x256xf32> to vector<1x4x256xf32>
    tpu.vector_store %arg5[%c1_74, %c0_75, %c0_76], %208 {strides = array<i32>} : memref<2x4x256xf32, #tpu.memory_space<vmem>>, vector<1x4x256xf32>,
    return
  }
  func.func @transform_0(%arg0: i32) -> (i32, i32, i32) {
    %c0_i32 = arith.constant 0 : i32
    %c0_i32_0 = arith.constant 0 : i32
    %c0_i32_1 = arith.constant 0 : i32
    return %arg0, %c0_i32, %c0_i32_0 : i32, i32, i32
  }
  func.func @transform_1(%arg0: i32) -> (i32, i32) {
    %c0_i32 = arith.constant 0 : i32
    %c0_i32_0 = arith.constant 0 : i32
    %c0_i32_1 = arith.constant 0 : i32
    return %c0_i32, %c0_i32_0 : i32, i32
  }
  func.func @transform_2(%arg0: i32) -> (i32, i32) {
    %c0_i32 = arith.constant 0 : i32
    %c0_i32_0 = arith.constant 0 : i32
    %c0_i32_1 = arith.constant 0 : i32
    return %c0_i32, %c0_i32_0 : i32, i32
  }
  func.func @transform_3(%arg0: i32) -> (i32, i32, i32) {
    %c0_i32 = arith.constant 0 : i32
    %c0_i32_0 = arith.constant 0 : i32
    %c0_i32_1 = arith.constant 0 : i32
    %c0_i32_2 = arith.constant 0 : i32
    return %c0_i32, %c0_i32_0, %c0_i32_1 : i32, i32, i32
  }
  func.func @transform_4(%arg0: i32) -> (i32, i32, i32) {
    %c0_i32 = arith.constant 0 : i32
    %c0_i32_0 = arith.constant 0 : i32
    %c0_i32_1 = arith.constant 0 : i32
    return %arg0, %c0_i32, %c0_i32_0 : i32, i32, i32
  }
}

</mosaic_0001>

<bundles_post_ra>
// kernel: tpu_custom_call.1
= control target key start
LH: loop header
LB: loop body
LE: loop exit
PB: predicated region body
PF: predicated region fallthrough
CT: control target
= control target key end

     0   :  { %9 = vsyncpa [#allocation4], 0  ;;  %s1742_s0 = inlined_call_operand.hbm [shape: f32[2,4,256], index: 0, kind: input, shape index: {}]   ;;  %s1743_s1 = inlined_call_operand.hbm [shape: bf16[8,72], index: 1, kind: input, shape index: {}]   ;;  %s1744_s2 = inlined_call_operand.hbm [shape: bf16[8,72], index: 2, kind: input, shape index: {}]   ;;  %s1745_s3 = inlined_call_operand.hbm [shape: f32[9,1,512], index: 3, kind: input, shape index: {}]   ;;  %s1746_s4 = inlined_call_operand.hbm [shape: f32[2,4,256], index: 4, kind: output, shape index: {}]  }
   0x1   :  { %10 = vsyncpa [#allocation7], 0 }
   0x2   :  { %11 = vsyncpa [#allocation10], 0 }
   0x3   :  { %12 = vsyncpa [#allocation5], 0  ;;  %s1178_s15 = smov [#allocation6]   ;;  %s1179_s17 = smov [#allocation3]  }
   0x4   :  { %s31_s16 = sshll.u32 %s1178_s15, 4  ;;  %s18_s18 = sshll.u32 %s1179_s17, 4  ;;  %s32_s16 = int_to_ptr.vmem [resolvable:$true] %s31_s16  ;;  %s19_s18 = int_to_ptr.vmem [resolvable:$true] %s18_s18 }
   0x5   :  { %s1078_s19 = scalar_lea.vmem %s32_s16, 64  ;;  %p1083_p1 = scmp.lt.s32.totalorder %s32_s16, %s32_s16 }
   0x6   :  { %p1079_p0 = scmp.ne.s32.totalorder %s32_s16, %s1078_s19  ;;  %p1084_p2 = scmp.lt.s32.totalorder %s1078_s19, %s1078_s19 }
   0x8   :  { %p1085_p3 = por %p1084_p2, %p1083_p1 }
   0xa   :  { %p1086_p4 = pnand %p1085_p3, %p1079_p0 }
   0xc   :  { %1089 = shalt.err (!%p1086_p4)
}
   0xd   :  { %34 = dma.hbm_to_vmem [thread:$0]  %s1743_s1, 64, %s32_s16, [#allocation7]  }
   0xe   :  { %s1098_s22 = scalar_lea.vmem %s19_s18, 256  ;;  %p1103_p6 = scmp.lt.s32.totalorder %s19_s18, %s19_s18 }
   0xf   :  { %p1099_p5 = scmp.ne.s32.totalorder %s19_s18, %s1098_s22  ;;  %p1104_p7 = scmp.lt.s32.totalorder %s1098_s22, %s1098_s22 }
  0x11   :  { %p1105_p8 = por %p1104_p7, %p1103_p6 }
  0x13   :  { %p1106_p9 = pnand %p1105_p8, %p1099_p5 }
  0x15   :  { %1109 = shalt.err (!%p1106_p9)
}
  0x16   :  { %s1180_s23 = smov 128   ;;  %s1181_s24 = smov 8  }
  0x17   :  { %24 = dma.hbm_to_vmem [thread:$0]  %s1742_s0, 256, %s19_s18, [#allocation4], %s1180_s23, %s1180_s23, %s1181_s24  }
  0x18   :  { %s1182_s27 = smov [#allocation8]   ;;  %s1183_s29 = smov [#allocation9]  }
  0x19   :  { %s41_s28 = sshll.u32 %s1182_s27, 4  ;;  %s50_s1 = sshll.u32 %s1183_s29, 4  ;;  %s42_s28 = int_to_ptr.vmem [resolvable:$true] %s41_s28  ;;  %s51_s1 = int_to_ptr.vmem [resolvable:$true] %s50_s1 }
  0x1a   :  { %s1118_s30 = scalar_lea.vmem %s42_s28, 64  ;;  %p1123_p11 = scmp.lt.s32.totalorder %s42_s28, %s42_s28 }
  0x1b   :  { %p1119_p10 = scmp.ne.s32.totalorder %s42_s28, %s1118_s30  ;;  %p1124_p12 = scmp.lt.s32.totalorder %s1118_s30, %s1118_s30 }
  0x1d   :  { %p1125_p13 = por %p1124_p12, %p1123_p11 }
  0x1f   :  { %p1126_p0 = pnand %p1125_p13, %p1119_p10 }
  0x21   :  { %1129 = shalt.err (!%p1126_p0)
}
  0x22   :  { %44 = dma.hbm_to_vmem [thread:$0]  %s1744_s2, 64, %s42_s28, [#allocation7]  }
  0x23   :  { %s1138_s7 = scalar_lea.vmem %s51_s1, 576  ;;  %p1143_p2 = scmp.lt.s32.totalorder %s51_s1, %s51_s1 }
  0x24   :  { %p1139_p1 = scmp.ne.s32.totalorder %s51_s1, %s1138_s7  ;;  %p1144_p3 = scmp.lt.s32.totalorder %s1138_s7, %s1138_s7 }
  0x26   :  { %p1145_p4 = por %p1144_p3, %p1143_p2 }
  0x28   :  { %p1146_p5 = pnand %p1145_p4, %p1139_p1 }
  0x2a   :  { %1149 = shalt.err (!%p1146_p5)
}
  0x2b   :  { %s1184_s0 = smov 64   ;;  %s1185_s8 = smov 4  }
  0x2c   :  { %56 = dma.hbm_to_vmem [thread:$0]  %s1745_s3, 576, %s51_s1, [#allocation10], %s1184_s0, %s1184_s0, %s1185_s8  }
  0x2d   :  { %1170 = dma.done.wait [#allocation4], 256  }
  0x2e   :  { %1171 = vsyncadd [#allocation4], 4294967040 }
  0x2f   :  { %1172 = dma.done.wait [#allocation7], 128  }
  0x30   :  { %1173 = vsyncadd [#allocation7], 4294967168 }
  0x31   :  { %1174 = dma.done.wait [#allocation10], 576  }
  0x32   :  { %1175 = vsyncadd [#allocation10], 4294966720  ;;  %vm89_vm0 = vcmask 1043456   ;;  %v1237_v0 = vld [vmem:[#allocation3 + $0x8] sm:$0xff]  ;;  %v1239_v1 = vld [vmem:[#allocation3] sm:$0xff]  ;;  %s1186_s2 = smov 111   ;;  %v102_v9 = vlaneseq }
  0x33   :  { %v1243_v2 = vsel %vm89_vm0, %v1237_v0, 0.0  ;;  %v1247_v3 = vsel %vm89_vm0, %v1239_v1, 0.0  ;;  %v1251_v4 = vcombine.high %v1237_v0, %v1237_v0  ;;  %v1263_v6 = vcombine.high %v1239_v1, %v1239_v1  ;;  %s1187_s3 = smov 113   ;;  %s1188_s11 = smov 112   ;;  %v79_v14 = vld [vmem:[#allocation9 + $0x20] sm:$0xf] }
  0x34   :  { %398 = vrot.lane.b32.xlu1 %v1243_v2, %s1186_s2  ;;  %394 = vrot.lane.b32.xlu0 %v1247_v3, %s1186_s2  ;;  %s1189_s12 = smov 127   ;;  %s1190_s13 = smov 15   ;;  %v1193_v8 = vmov 0   ;;  %v111_v10 = vshrl.u32 %v102_v9, 7  ;;  %v1331_v11 = vand.u32 127, %v102_v9  ;;  %vm1195_vm5 = vmmov 1  }
  0x35   :  { %v1259_v5 = vsel %vm89_vm0, %v1251_v4, 0.0  ;;  %v1271_v7 = vsel %vm89_vm0, %v1263_v6, 0.0  ;;  %s1191_s14 = smov 1   ;;  %s1192_s15 = smov 17   ;;  %540 = vmatprep.mubr.bf16.mxu0 %v1193_v8  ;;  %581 = vmatprep.mubr.bf16.mxu1 %v1193_v8  ;;  %v78_v43 = vld [vmem:[#allocation9 + $0x1c] sm:$0xf]  ;;  %vm1029_vm6 = vmpackc.low %vm1195_vm5, %vm89_vm0 }
  0x36   :  { %s1194_s16 = smov 16   ;;  %v1333_v12 = vsub.s32 2, %v111_v10  ;;  %v1335_v13 = vsub.s32 3, %v111_v10  ;;  %vm402_vm1 = vcmp.lt.s32.totalorder %v1331_v11, 111  ;;  %v1341_v18 = vsub.s32 0, %v111_v10  ;;  %s1196_s17 = smov [#allocation11]  }
  0x37   :  { %v1346_v20 = vsub.s32 1, %v111_v10  ;;  %v77_v44 = vld [vmem:[#allocation9 + $0x18] sm:$0xf]  ;;  %vm360_vm2 = vcmp.lt.s32.totalorder %v1331_v11, 112  ;;  %vm318_vm3 = vcmp.lt.s32.totalorder %v1331_v11, 113  ;;  %vm276_vm4 = vcmp.lt.s32.totalorder %v1331_v11, 127 }
  0x38   :  { %400 = vrot.lane.b32.xlu1 %v1259_v5, %s1186_s2  ;;  %310 = vrot.lane.b32.xlu0 %v1247_v3, %s1187_s3  ;;  %v1339_v17 = vrot.slane %v79_v14, %v1333_v12  ;;  %v1344_v19 = vrot.slane %v79_v14, %v1335_v13  ;;  %v1354_v26 = vrot.slane %v79_v14, %v1341_v18  ;;  %vm188_vm7 = vcmp.lt.s32.totalorder %v1331_v11, 15  ;;  %s1007_s18 = sshll.u32 %s1196_s17, 4  ;;  %s1008_s18 = int_to_ptr.vmem [resolvable:$true] %s1007_s18 }
  0x39   :  { %v1358_v28 = vrot.slane %v79_v14, %v1346_v20  ;;  %v1373_v45 = vrot.slane %v77_v44, %v1335_v13  ;;  %v1376_v46 = vrot.slane %v77_v44, %v1346_v20  ;;  %v1383_v51 = vrot.slane %v77_v44, %v1333_v12  ;;  %s1150_s19 = scalar_lea.vmem %s1008_s18, 256  ;;  %p1155_p7 = scmp.lt.s32.totalorder %s1008_s18, %s1008_s18 }
  0x3a   :  { %v1386_v52 = vrot.slane %v78_v43, %v1341_v18  ;;  %v1391_v54 = vrot.slane %v78_v43, %v1335_v13  ;;  %v1394_v55 = vrot.slane %v78_v43, %v1346_v20  ;;  %v1397_v56 = vrot.slane %v78_v43, %v1333_v12  ;;  %p1151_p6 = scmp.ne.s32.totalorder %s1008_s18, %s1150_s19  ;;  %p1156_p8 = scmp.lt.s32.totalorder %s1150_s19, %s1150_s19 }
  0x3b   :  { %v1400_v57 = vrot.slane %v77_v44, %v1341_v18  ;;  %vm230_vm8 = vcmp.lt.s32.totalorder %v1331_v11, 1  ;;  %vm104_vm9 = vcmp.lt.s32.totalorder %v1331_v11, 17  ;;  %vm146_vm10 = vcmp.lt.s32.totalorder %v1331_v11, 16 }
  0x3c   :  { %312 = vrot.lane.b32.xlu1 %v1271_v7, %s1187_s3  ;;  %396 = vrot.lane.b32.xlu0 %v1271_v7, %s1186_s2  ;;  %vm492_vm11 = vcmask 588800   ;;  %p1157_p9 = por %p1156_p8, %p1155_p7 }
  0x3e   :  { %p1158_p10 = pnand %p1157_p9, %p1151_p6 }
  0x40   :  { %316 = vrot.lane.b32.xlu1 %v1259_v5, %s1187_s3  ;;  %314 = vrot.lane.b32.xlu0 %v1243_v2, %s1187_s3 }
  0x44   :  { %354 = vrot.lane.b32.xlu1 %v1271_v7, %s1188_s11  ;;  %352 = vrot.lane.b32.xlu0 %v1247_v3, %s1188_s11 }
  0x48   :  { %358 = vrot.lane.b32.xlu1 %v1259_v5, %s1188_s11  ;;  %356 = vrot.lane.b32.xlu0 %v1243_v2, %s1188_s11 }
  0x4c   :  { %270 = vrot.lane.b32.xlu1 %v1271_v7, %s1189_s12  ;;  %268 = vrot.lane.b32.xlu0 %v1247_v3, %s1189_s12 }
  0x50   :  { %274 = vrot.lane.b32.xlu1 %v1259_v5, %s1189_s12  ;;  %272 = vrot.lane.b32.xlu0 %v1243_v2, %s1189_s12 }
  0x54   :  { %182 = vrot.lane.b32.xlu1 %v1271_v7, %s1190_s13  ;;  %180 = vrot.lane.b32.xlu0 %v1247_v3, %s1190_s13 }
  0x58   :  { %186 = vrot.lane.b32.xlu1 %v1259_v5, %s1190_s13  ;;  %184 = vrot.lane.b32.xlu0 %v1243_v2, %s1190_s13 }
  0x5c   :  { %224 = vrot.lane.b32.xlu1 %v1271_v7, %s1191_s14  ;;  %222 = vrot.lane.b32.xlu0 %v1247_v3, %s1191_s14 }
  0x60   :  { %228 = vrot.lane.b32.xlu1 %v1259_v5, %s1191_s14  ;;  %226 = vrot.lane.b32.xlu0 %v1243_v2, %s1191_s14 }
  0x64   :  { %96 = vrot.lane.b32.xlu1 %v1271_v7, %s1192_s15  ;;  %94 = vrot.lane.b32.xlu0 %v1247_v3, %s1192_s15 }
  0x68   :  { %100 = vrot.lane.b32.xlu1 %v1259_v5, %s1192_s15  ;;  %98 = vrot.lane.b32.xlu0 %v1243_v2, %s1192_s15 }
  0x6c   :  { %140 = vrot.lane.b32.xlu1 %v1271_v7, %s1194_s16  ;;  %138 = vrot.lane.b32.xlu0 %v1247_v3, %s1194_s16 }
  0x70   :  { %144 = vrot.lane.b32.xlu1 %v1259_v5, %s1194_s16  ;;  %142 = vrot.lane.b32.xlu0 %v1243_v2, %s1194_s16 }
  0xa6   :  { %v399_v15 = vpop.permute.xlu1 %398  ;;  %v395_v16 = vpop.permute.xlu0 %394 }
  0xaa   :  { %v401_v21 = vpop.permute.xlu1 %400  ;;  %v311_v22 = vpop.permute.xlu0 %310 }
  0xab   :  { %v403_v23 = vsel %vm402_vm1, %v399_v15, %v401_v21  ;;  %v406_v24 = vsel %vm402_vm1, %v401_v21, %v395_v16 }
  0xac   :  { %v430_v25 = vmul.f32 %v1339_v17, %v403_v23  ;;  %v431_v27 = vmul.f32 %v1344_v19, %v406_v24  ;;  %v76_v24 = vld [vmem:[#allocation9 + $0x14] sm:$0xf] }
  0xae   :  { %v313_v29 = vpop.permute.xlu1 %312  ;;  %v397_v30 = vpop.permute.xlu0 %396  ;;  %v491_v31 = vpack.c.bf16 %v431_v27, %v431_v27  ;;  %v490_v32 = vpack.c.bf16 %v430_v25, %v430_v25 }
  0xaf   :  { %v404_v33 = vsel %vm402_vm1, %v397_v30, %v399_v15  ;;  %v405_v34 = vsel %vm402_vm1, %v395_v16, %v397_v30  ;;  %v321_v59 = vsel %vm318_vm3, %v311_v22, %v313_v29 }
  0xb0   :  { %v428_v35 = vmul.f32 %v1354_v26, %v405_v34  ;;  %1023 = vmatprep.subr.msk.bf16.mxu1 %vm89_vm0, %v491_v31  ;;  %v503_v36 = vsel %vm89_vm0, %v490_v32, 0  ;;  %v429_v37 = vmul.f32 %v1358_v28, %v404_v33  ;;  %v344_v25 = vmul.f32 %v1400_v57, %v321_v59 }
  0xb1   :  { %556 = vmatpush1.bf16.msra.mxu1 %v503_v36  ;;  %v1422_v33 = vrot.slane %v76_v24, %v1341_v18 }
  0xb2   :  { %v317_v38 = vpop.permute.xlu1 %316  ;;  %v315_v39 = vpop.permute.xlu0 %314  ;;  %v489_v40 = vpack.c.bf16 %v429_v37, %v429_v37  ;;  %v488_v41 = vpack.c.bf16 %v428_v35, %v428_v35  ;;  %v1425_v35 = vrot.slane %v76_v24, %v1335_v13  ;;  %v1430_v37 = vrot.slane %v76_v24, %v1346_v20 }
  0xb3   :  { %v322_v49 = vsel %vm318_vm3, %v317_v38, %v311_v22  ;;  %v320_v50 = vsel %vm318_vm3, %v313_v29, %v315_v39  ;;  %v319_v58 = vsel %vm318_vm3, %v315_v39, %v317_v38  ;;  %v1433_v38 = vrot.slane %v76_v24, %v1333_v12 }
  0xb4   :  { %1021 = vmatprep.subr.msk.bf16.mxu0 %vm89_vm0, %v489_v40  ;;  %v497_v42 = vsel %vm89_vm0, %v488_v41, 0  ;;  %v347_v60 = vmul.f32 %v1373_v45, %v322_v49  ;;  %v345_v61 = vmul.f32 %v1376_v46, %v320_v50  ;;  %v346_v16 = vmul.f32 %v1383_v51, %v319_v58 }
  0xb5   :  { %515 = vmatpush1.bf16.msra.mxu0 %v497_v42 }
  0xb6   :  { %v355_v47 = vpop.permute.xlu1 %354  ;;  %v353_v48 = vpop.permute.xlu0 %352 }
  0xb7   :  { %v363_v53 = vsel %vm360_vm2, %v353_v48, %v355_v47 }
  0xb8   :  { %v386_v9 = vmul.f32 %v1386_v52, %v363_v53 }
  0xba   :  { %v359_v62 = vpop.permute.xlu1 %358  ;;  %v357_v63 = vpop.permute.xlu0 %356  ;;  %v484_v34 = vpack.c.bf16 %v386_v9, %v344_v25 }
  0xbb   :  { %v364_v10 = vsel %vm360_vm2, %v359_v62, %v353_v48  ;;  %v361_v14 = vsel %vm360_vm2, %v357_v63, %v359_v62  ;;  %v362_v15 = vsel %vm360_vm2, %v355_v47, %v357_v63  ;;  %v74_v62 = vld [vmem:[#allocation9 + $0x8] sm:$0xf]  ;;  %v75_v63 = vld [vmem:[#allocation9 + $0xc] sm:$0xf] }
  0xbc   :  { %v389_v21 = vmul.f32 %v1391_v54, %v364_v10  ;;  %v387_v22 = vmul.f32 %v1394_v55, %v362_v15  ;;  %v388_v23 = vmul.f32 %v1397_v56, %v361_v14  ;;  %v1464_v14 = vrot.slane %v74_v62, %v1333_v12 }
  0xbd   :  { %v1467_v15 = vrot.slane %v74_v62, %v1335_v13  ;;  %v1474_v24 = vrot.slane %v75_v63, %v1341_v18  ;;  %v1477_v25 = vrot.slane %v75_v63, %v1333_v12 }
  0xbe   :  { %v271_v27 = vpop.permute.xlu1 %270  ;;  %v269_v29 = vpop.permute.xlu0 %268  ;;  %v485_v30 = vpack.c.bf16 %v387_v22, %v345_v61  ;;  %v487_v31 = vpack.c.bf16 %v389_v21, %v347_v60  ;;  %v486_v32 = vpack.c.bf16 %v388_v23, %v346_v16 }
  0xbf   :  { %v279_v36 = vsel %vm276_vm4, %v269_v29, %v271_v27 }
  0xc0   :  { %516 = vmatprep.subr.bf16.mxu0 %v485_v30  ;;  %557 = vmatprep.subr.bf16.mxu1 %v487_v31  ;;  %v302_v41 = vmul.f32 %v1422_v33, %v279_v36  ;;  %v1484_v31 = vrot.slane %v75_v63, %v1335_v13 }
  0xc1   :  { %517 = vmatpush1.bf16.msra.mxu0 %v484_v34  ;;  %558 = vmatpush1.bf16.msra.mxu1 %v486_v32 }
  0xc2   :  { %v275_v39 = vpop.permute.xlu1 %274  ;;  %v273_v40 = vpop.permute.xlu0 %272  ;;  %v1033_v61 = vpack.c.bf16 %v302_v41, %v1239_v1 }
  0xc3   :  { %v280_v42 = vsel %vm276_vm4, %v275_v39, %v269_v29  ;;  %v277_v43 = vsel %vm276_vm4, %v273_v40, %v275_v39  ;;  %v278_v44 = vsel %vm276_vm4, %v271_v27, %v273_v40 }
  0xc4   :  { %v305_v47 = vmul.f32 %v1425_v35, %v280_v42  ;;  %v303_v48 = vmul.f32 %v1430_v37, %v278_v44  ;;  %v304_v49 = vmul.f32 %v1433_v38, %v277_v43 }
  0xc6   :  { %v1036_v50 = vpack.c.bf16 %v305_v47, %v1251_v4  ;;  %v1030_v53 = vpack.c.bf16 %v303_v48, %v1263_v6  ;;  %v1039_v58 = vpack.c.bf16 %v304_v49, %v1237_v0  ;;  %v183_v59 = vpop.permute.xlu1 %182  ;;  %v181_v60 = vpop.permute.xlu0 %180  ;;  %v1452_v4 = vrot.slane %v74_v62, %v1346_v20 }
  0xc7   :  { %v1456_v0 = vrot.slane %v75_v63, %v1346_v20  ;;  %v191_v1 = vsel %vm188_vm7, %v181_v60, %v183_v59  ;;  %v1461_v6 = vrot.slane %v74_v62, %v1341_v18  ;;  %v72_v62 = vld [vmem:[#allocation9] sm:$0xf]  ;;  %v73_v63 = vld [vmem:[#allocation9 + $0x4] sm:$0xf] }
  0xc8   :  { %1031 = vmatprep.subr.msk.bf16.mxu0 %vm1029_vm6, %v1030_v53  ;;  %1037 = vmatprep.subr.msk.bf16.mxu1 %vm1029_vm6, %v1036_v50  ;;  %v215_v27 = vmul.f32 %v1452_v4, %v191_v1  ;;  %v1502_v1 = vrot.slane %v72_v62, %v1346_v20 }
  0xc9   :  { %1034 = vmatpush1.bf16.msk.msra.mxu0 %vm1029_vm6, %v1033_v61  ;;  %1040 = vmatpush1.bf16.msk.msra.mxu1 %vm1029_vm6, %v1039_v58 }
  0xca   :  { %v187_v9 = vpop.permute.xlu1 %186  ;;  %v185_v10 = vpop.permute.xlu0 %184 }
  0xcb   :  { %v192_v22 = vsel %vm188_vm7, %v187_v9, %v181_v60  ;;  %v190_v29 = vsel %vm188_vm7, %v183_v59, %v185_v10  ;;  %v189_v32 = vsel %vm188_vm7, %v185_v10, %v187_v9 }
  0xcc   :  { %v214_v34 = vmul.f32 %v1461_v6, %v192_v22  ;;  %v216_v41 = vmul.f32 %v1464_v14, %v190_v29  ;;  %v217_v47 = vmul.f32 %v1467_v15, %v189_v32  ;;  %v1511_v22 = vrot.slane %v72_v62, %v1341_v18 }
  0xce   :  { %v225_v16 = vpop.permute.xlu1 %224  ;;  %v223_v21 = vpop.permute.xlu0 %222 }
  0xcf   :  { %v233_v23 = vsel %vm230_vm8, %v223_v21, %v225_v16 }
  0xd0   :  { %v257_v30 = vmul.f32 %v1456_v0, %v233_v23  ;;  %v1514_v23 = vrot.slane %v72_v62, %v1333_v12 }
  0xd2   :  { %v229_v36 = vpop.permute.xlu1 %228  ;;  %v227_v39 = vpop.permute.xlu0 %226  ;;  %v477_v40 = vpack.c.bf16 %v257_v30, %v215_v27  ;;  %v1517_v27 = vrot.slane %v72_v62, %v1335_v13 }
  0xd3   :  { %v234_v42 = vsel %vm230_vm8, %v229_v36, %v223_v21  ;;  %v231_v43 = vsel %vm230_vm8, %v227_v39, %v229_v36  ;;  %v232_v44 = vsel %vm230_vm8, %v225_v16, %v227_v39  ;;  %v1506_v16 = vrot.slane %v73_v63, %v1346_v20 }
  0xd4   :  { %v256_v48 = vmul.f32 %v1474_v24, %v234_v42  ;;  %v258_v49 = vmul.f32 %v1477_v25, %v232_v44  ;;  %v259_v50 = vmul.f32 %v1484_v31, %v231_v43  ;;  %520 = vmatprep.subr.bf16.mxu0 %v477_v40  ;;  %v1527_v36 = vrot.slane %v73_v63, %v1333_v12 }
  0xd5   :  { %v1534_v42 = vrot.slane %v73_v63, %v1335_v13 }
  0xd6   :  { %v97_v53 = vpop.permute.xlu1 %96  ;;  %v95_v58 = vpop.permute.xlu0 %94  ;;  %v476_v59 = vpack.c.bf16 %v256_v48, %v214_v34  ;;  %v479_v60 = vpack.c.bf16 %v259_v50, %v217_v47  ;;  %v478_v61 = vpack.c.bf16 %v258_v49, %v216_v41  ;;  %v1524_v34 = vrot.slane %v73_v63, %v1341_v18 }
  0xd7   :  { %v107_v21 = vsel %vm104_vm9, %v95_v58, %v97_v53 }
  0xd8   :  { %521 = vmatpush1.bf16.msra.mxu0 %v476_v59  ;;  %561 = vmatprep.subr.bf16.mxu1 %v479_v60  ;;  %v131_v39 = vmul.f32 %v1502_v1, %v107_v21 }
  0xd9   :  { %562 = vmatpush1.bf16.msra.mxu1 %v478_v61 }
  0xda   :  { %v101_v9 = vpop.permute.xlu1 %100  ;;  %v99_v10 = vpop.permute.xlu0 %98 }
  0xdb   :  { %v108_v32 = vsel %vm104_vm9, %v101_v9, %v95_v58  ;;  %v106_v40 = vsel %vm104_vm9, %v97_v53, %v99_v10  ;;  %v105_v43 = vsel %vm104_vm9, %v99_v10, %v101_v9  ;;  %v70_v9 = vld [vmem:[#allocation6] sm:$0xf] }
  0xdc   :  { %v130_v44 = vmul.f32 %v1511_v22, %v108_v32  ;;  %v132_v12 = vmul.f32 %v1514_v23, %v106_v40  ;;  %v133_v53 = vmul.f32 %v1517_v27, %v105_v43 }
  0xde   :  { %v141_v29 = vpop.permute.xlu1 %140  ;;  %v139_v30 = vpop.permute.xlu0 %138 }
  0xdf   :  { %v149_v20 = vsel %vm146_vm10, %v139_v30, %v141_v29 }
  0xe0   :  { %v173_v41 = vmul.f32 %v1506_v16, %v149_v20 }
  0xe2   :  { %v145_v18 = vpop.permute.xlu1 %144  ;;  %v143_v47 = vpop.permute.xlu0 %142  ;;  %v473_v48 = vpack.c.bf16 %v173_v41, %v131_v39 }
  0xe3   :  { %v150_v49 = vsel %vm146_vm10, %v145_v18, %v139_v30  ;;  %v147_v50 = vsel %vm146_vm10, %v143_v47, %v145_v18  ;;  %v148_v13 = vsel %vm146_vm10, %v141_v29, %v143_v47 }
  0xe4   :  { %v172_v58 = vmul.f32 %v1524_v34, %v150_v49  ;;  %v174_v59 = vmul.f32 %v1527_v36, %v148_v13  ;;  %v175_v60 = vmul.f32 %v1534_v42, %v147_v50  ;;  %522 = vmatprep.subr.bf16.mxu0 %v473_v48 }
  0xe6   :  { %v472_v61 = vpack.c.bf16 %v172_v58, %v130_v44  ;;  %v475_v62 = vpack.c.bf16 %v175_v60, %v133_v53  ;;  %v474_v63 = vpack.c.bf16 %v174_v59, %v132_v12 }
  0xe8   :  { %523 = vmatpush1.bf16.msra.mxu0 %v472_v61  ;;  %563 = vmatprep.subr.bf16.mxu1 %v475_v62 }
  0xe9   :  { %564 = vmatpush1.bf16.msra.mxu1 %v474_v63 }
  0xeb   :  { %1022 = vmatmul.mubr.msk.bf16.vlgmr.msra.gmra.mxu0 %vm492_vm11, %v70_v9 }
  0xec   :  { %1024 = vmatmul.mubr.msk.bf16.vlgmr.msra.gmra.mxu1 %vm492_vm11, %v70_v9  ;;  %897 = vmatprep.mubr.bf16.mxu0 %v1193_v8 }
  0xed   :  { %938 = vmatprep.mubr.bf16.mxu1 %v1193_v8 }
 0x1ab   :  { %v542_v10 = vpop.f32.mrf.mxu0 }
 0x1ac   :  { %v583_v21 = vpop.f32.mrf.mxu1  ;;  %v590_v43 = vmul.f32 %v542_v10, %v542_v10 }
 0x1ad   :  { %v544_v29 = vpop.f32.mrf.mxu0  ;;  %v608_v48 = vmul.f32 %v583_v21, %v583_v21 }
 0x1ae   :  { %v585_v30 = vpop.f32.mrf.mxu1  ;;  %v592_v32 = vadd.f32 %v544_v29, %v542_v10  ;;  %v591_v20 = vmul.f32 %v544_v29, %v544_v29 }
 0x1af   :  { %v546_v39 = vpop.f32.mrf.mxu0  ;;  %v610_v40 = vadd.f32 %v585_v30, %v583_v21  ;;  %v609_v12 = vmul.f32 %v585_v30, %v585_v30 }
 0x1b0   :  { %v587_v41 = vpop.f32.mrf.mxu1  ;;  %593 = vadd.xlane.f32.xlu0 %v592_v32  ;;  %v595_v47 = vadd.f32 %v591_v20, %v590_v43 }
 0x1b1   :  { %611 = vadd.xlane.f32.xlu1 %v610_v40  ;;  %v547_v44 = vpop.f32.mrf.mxu0  ;;  %v613_v49 = vadd.f32 %v609_v12, %v608_v48 }
 0x1b2   :  { %v588_v18 = vpop.f32.mrf.mxu1 }
 0x1b4   :  { %596 = vadd.xlane.f32.xlu0 %v595_v47 }
 0x1b8   :  { %614 = vadd.xlane.f32.xlu0 %v613_v49 }
 0x239   :  { %v594_v8 = vpop.xlane.xlu0 %593 }
 0x23a   :  { %v598_v50 = vmul.f32 0.00390625, %v594_v8  ;;  %v612_v13 = vpop.xlane.xlu1 %611 }
 0x23b   :  { %v616_v60 = vmul.f32 0.00390625, %v612_v13 }
 0x23c   :  { %v600_v58 = vmul.f32 %v598_v50, %v598_v50  ;;  %v602_v40 = vsub.f32 %v542_v10, %v598_v50  ;;  %v603_v41 = vsub.f32 %v544_v29, %v598_v50 }
 0x23d   :  { %v597_v53 = vpop.xlane.xlu0 %596  ;;  %v618_v9 = vmul.f32 %v616_v60, %v616_v60  ;;  %v620_v47 = vsub.f32 %v583_v21, %v616_v60  ;;  %v621_v8 = vsub.f32 %v585_v30, %v616_v60 }
 0x23e   :  { %v599_v59 = vmul.f32 0.00390625, %v597_v53 }
 0x240   :  { %v601_v61 = vsub.f32 %v599_v59, %v600_v58 }
 0x241   :  { %v615_v62 = vpop.xlane.xlu0 %614 }
 0x242   :  { %v604_v63 = vadd.f32 1e-05, %v601_v61  ;;  %v617_v32 = vmul.f32 0.00390625, %v615_v62 }
 0x244   :  { %1062 = vrsqrt.f32 %v604_v63  ;;  %v619_v39 = vsub.f32 %v617_v32, %v618_v9 }
 0x246   :  { %v622_v20 = vadd.f32 1e-05, %v619_v39 }
 0x248   :  { %1064 = vrsqrt.f32 %v622_v20 }
 0x251   :  { %v1063_v43 = vpop.eup %1062 }
 0x252   :  { %v606_v44 = vmul.f32 %v1063_v43, %v602_v40  ;;  %v607_v18 = vmul.f32 %v1063_v43, %v603_v41 }
 0x254   :  { %v1554_v48 = vmax.f32 %v606_v44, 0.0  ;;  %v1556_v12 = vmax.f32 %v607_v18, 0.0 }
 0x255   :  { %v1065_v49 = vpop.eup %1064 }
 0x256   :  { %v624_v13 = vmul.f32 %v1065_v49, %v620_v47  ;;  %776 = vrot.lane.b32.xlu0 %v1556_v12, %s1186_s2  ;;  %774 = vrot.lane.b32.xlu1 %v1554_v48, %s1186_s2  ;;  %v625_v53 = vmul.f32 %v1065_v49, %v621_v8 }
 0x258   :  { %v1562_v10 = vmax.f32 %v624_v13, 0.0  ;;  %v1568_v21 = vmax.f32 %v625_v53, 0.0 }
 0x25a   :  { %734 = vrot.lane.b32.xlu0 %v1554_v48, %s1187_s3  ;;  %778 = vrot.lane.b32.xlu1 %v1562_v10, %s1186_s2 }
 0x25e   :  { %738 = vrot.lane.b32.xlu0 %v1562_v10, %s1187_s3  ;;  %780 = vrot.lane.b32.xlu1 %v1568_v21, %s1186_s2 }
 0x262   :  { %754 = vrot.lane.b32.xlu0 %v1554_v48, %s1188_s11  ;;  %736 = vrot.lane.b32.xlu1 %v1556_v12, %s1187_s3 }
 0x266   :  { %758 = vrot.lane.b32.xlu0 %v1562_v10, %s1188_s11  ;;  %740 = vrot.lane.b32.xlu1 %v1568_v21, %s1187_s3 }
 0x26a   :  { %714 = vrot.lane.b32.xlu0 %v1554_v48, %s1189_s12  ;;  %756 = vrot.lane.b32.xlu1 %v1556_v12, %s1188_s11 }
 0x26e   :  { %718 = vrot.lane.b32.xlu0 %v1562_v10, %s1189_s12  ;;  %760 = vrot.lane.b32.xlu1 %v1568_v21, %s1188_s11 }
 0x272   :  { %670 = vrot.lane.b32.xlu0 %v1554_v48, %s1190_s13  ;;  %716 = vrot.lane.b32.xlu1 %v1556_v12, %s1189_s12 }
 0x276   :  { %674 = vrot.lane.b32.xlu0 %v1562_v10, %s1190_s13  ;;  %720 = vrot.lane.b32.xlu1 %v1568_v21, %s1189_s12 }
 0x27a   :  { %690 = vrot.lane.b32.xlu0 %v1554_v48, %s1191_s14  ;;  %672 = vrot.lane.b32.xlu1 %v1556_v12, %s1190_s13 }
 0x27e   :  { %694 = vrot.lane.b32.xlu0 %v1562_v10, %s1191_s14  ;;  %676 = vrot.lane.b32.xlu1 %v1568_v21, %s1190_s13 }
 0x282   :  { %630 = vrot.lane.b32.xlu0 %v1554_v48, %s1192_s15  ;;  %692 = vrot.lane.b32.xlu1 %v1556_v12, %s1191_s14 }
 0x286   :  { %634 = vrot.lane.b32.xlu0 %v1562_v10, %s1192_s15  ;;  %696 = vrot.lane.b32.xlu1 %v1568_v21, %s1191_s14 }
 0x28a   :  { %650 = vrot.lane.b32.xlu0 %v1554_v48, %s1194_s16  ;;  %632 = vrot.lane.b32.xlu1 %v1556_v12, %s1192_s15 }
 0x28e   :  { %654 = vrot.lane.b32.xlu0 %v1562_v10, %s1194_s16  ;;  %636 = vrot.lane.b32.xlu1 %v1568_v21, %s1192_s15 }
 0x292   :  { %652 = vrot.lane.b32.xlu1 %v1556_v12, %s1194_s16 }
 0x296   :  { %656 = vrot.lane.b32.xlu1 %v1568_v21, %s1194_s16 }
 0x2c8   :  { %v775_v29 = vpop.permute.xlu1 %774  ;;  %v777_v30 = vpop.permute.xlu0 %776 }
 0x2c9   :  { %v784_v50 = vsel %vm402_vm1, %v775_v29, %v777_v30 }
 0x2ca   :  { %v786_v58 = vmul.f32 %v784_v50, %v1354_v26 }
 0x2cc   :  { %v779_v59 = vpop.permute.xlu1 %778  ;;  %v735_v60 = vpop.permute.xlu0 %734  ;;  %v846_v62 = vpack.c.bf16 %v786_v58, %v786_v58 }
 0x2cd   :  { %v783_v61 = vsel %vm402_vm1, %v777_v30, %v779_v59 }
 0x2ce   :  { %v787_v63 = vmul.f32 %v783_v61, %v1358_v28  ;;  %v854_v43 = vsel %vm89_vm0, %v846_v62, 0 }
 0x2d0   :  { %v847_v9 = vpack.c.bf16 %v787_v63, %v787_v63  ;;  %v781_v32 = vpop.permute.xlu1 %780  ;;  %v739_v39 = vpop.permute.xlu0 %738 }
 0x2d1   :  { %v782_v20 = vsel %vm402_vm1, %v779_v59, %v781_v32  ;;  %v785_v40 = vsel %vm402_vm1, %v781_v32, %v775_v29 }
 0x2d2   :  { %v788_v41 = vmul.f32 %v782_v20, %v1339_v17  ;;  %v789_v26 = vmul.f32 %v785_v40, %v1344_v19  ;;  %1025 = vmatprep.subr.msk.bf16.mxu0 %vm89_vm0, %v847_v9 }
 0x2d3   :  { %872 = vmatpush1.bf16.msra.mxu0 %v854_v43 }
 0x2d4   :  { %v848_v44 = vpack.c.bf16 %v788_v41, %v788_v41  ;;  %v849_v28 = vpack.c.bf16 %v789_v26, %v789_v26  ;;  %v737_v18 = vpop.permute.xlu1 %736  ;;  %v755_v47 = vpop.permute.xlu0 %754 }
 0x2d5   :  { %v743_v17 = vsel %vm318_vm3, %v737_v18, %v739_v39  ;;  %v744_v19 = vsel %vm318_vm3, %v735_v60, %v737_v18 }
 0x2d6   :  { %1027 = vmatprep.subr.msk.bf16.mxu1 %vm89_vm0, %v849_v28  ;;  %v860_v49 = vsel %vm89_vm0, %v848_v44, 0  ;;  %v746_v58 = vmul.f32 %v744_v19, %v1400_v57  ;;  %v747_v59 = vmul.f32 %v743_v17, %v1376_v46 }
 0x2d7   :  { %913 = vmatpush1.bf16.msra.mxu1 %v860_v49 }
 0x2d8   :  { %v741_v8 = vpop.permute.xlu1 %740  ;;  %v759_v13 = vpop.permute.xlu0 %758 }
 0x2d9   :  { %v742_v63 = vsel %vm318_vm3, %v739_v39, %v741_v8  ;;  %v745_v9 = vsel %vm318_vm3, %v741_v8, %v735_v60 }
 0x2dc   :  { %v757_v53 = vpop.permute.xlu1 %756  ;;  %v715_v29 = vpop.permute.xlu0 %714 }
 0x2dd   :  { %v763_v30 = vsel %vm360_vm2, %v757_v53, %v759_v13  ;;  %v764_v50 = vsel %vm360_vm2, %v755_v47, %v757_v53 }
 0x2de   :  { %v766_v61 = vmul.f32 %v764_v50, %v1386_v52  ;;  %v767_v62 = vmul.f32 %v763_v30, %v1394_v55  ;;  %v748_v52 = vmul.f32 %v742_v63, %v1383_v51  ;;  %v749_v55 = vmul.f32 %v745_v9, %v1373_v45 }
 0x2e0   :  { %v842_v32 = vpack.c.bf16 %v766_v61, %v746_v58  ;;  %v761_v20 = vpop.permute.xlu1 %760  ;;  %v719_v40 = vpop.permute.xlu0 %718  ;;  %v843_v41 = vpack.c.bf16 %v767_v62, %v747_v59 }
 0x2e1   :  { %v762_v26 = vsel %vm360_vm2, %v759_v13, %v761_v20  ;;  %v765_v46 = vsel %vm360_vm2, %v761_v20, %v755_v47 }
 0x2e2   :  { %v768_v57 = vmul.f32 %v762_v26, %v1397_v56  ;;  %v769_v39 = vmul.f32 %v765_v46, %v1391_v54  ;;  %873 = vmatprep.subr.bf16.mxu0 %v843_v41 }
 0x2e3   :  { %874 = vmatpush1.bf16.msra.mxu0 %v842_v32 }
 0x2e4   :  { %v844_v60 = vpack.c.bf16 %v768_v57, %v748_v52  ;;  %v717_v43 = vpop.permute.xlu1 %716  ;;  %v671_v44 = vpop.permute.xlu0 %670  ;;  %v845_v28 = vpack.c.bf16 %v769_v39, %v749_v55 }
 0x2e5   :  { %v723_v18 = vsel %vm276_vm4, %v717_v43, %v719_v40  ;;  %v724_v47 = vsel %vm276_vm4, %v715_v29, %v717_v43 }
 0x2e6   :  { %v726_v51 = vmul.f32 %v724_v47, %v1422_v33  ;;  %v727_v45 = vmul.f32 %v723_v18, %v1430_v37  ;;  %914 = vmatprep.subr.bf16.mxu1 %v845_v28 }
 0x2e7   :  { %915 = vmatpush1.bf16.msra.mxu1 %v844_v60 }
 0x2e8   :  { %v838_v54 = vpack.c.bf16 %v726_v51, %v1554_v48  ;;  %v721_v56 = vpop.permute.xlu1 %720  ;;  %v675_v49 = vpop.permute.xlu0 %674  ;;  %v839_v8 = vpack.c.bf16 %v727_v45, %v1556_v12 }
 0x2e9   :  { %v722_v13 = vsel %vm276_vm4, %v719_v40, %v721_v56  ;;  %v725_v17 = vsel %vm276_vm4, %v721_v56, %v715_v29 }
 0x2ea   :  { %v728_v19 = vmul.f32 %v722_v13, %v1433_v38  ;;  %v729_v33 = vmul.f32 %v725_v17, %v1425_v35  ;;  %875 = vmatprep.subr.bf16.mxu0 %v839_v8 }
 0x2eb   :  { %876 = vmatpush1.bf16.msra.mxu0 %v838_v54 }
 0x2ec   :  { %v840_v37 = vpack.c.bf16 %v728_v19, %v1562_v10  ;;  %v673_v53 = vpop.permute.xlu1 %672  ;;  %v691_v48 = vpop.permute.xlu0 %690  ;;  %v841_v30 = vpack.c.bf16 %v729_v33, %v1568_v21 }
 0x2ed   :  { %v680_v58 = vsel %vm188_vm7, %v671_v44, %v673_v53  ;;  %v679_v63 = vsel %vm188_vm7, %v673_v53, %v675_v49 }
 0x2ee   :  { %916 = vmatprep.subr.bf16.mxu1 %v841_v30  ;;  %v683_v38 = vmul.f32 %v680_v58, %v1452_v4  ;;  %v684_v55 = vmul.f32 %v679_v63, %v1464_v14 }
 0x2ef   :  { %917 = vmatpush1.bf16.msra.mxu1 %v840_v37 }
 0x2f0   :  { %v677_v12 = vpop.permute.xlu1 %676  ;;  %v695_v50 = vpop.permute.xlu0 %694 }
 0x2f1   :  { %v678_v21 = vsel %vm188_vm7, %v675_v49, %v677_v12  ;;  %v681_v62 = vsel %vm188_vm7, %v677_v12, %v671_v44 }
 0x2f2   :  { %v682_v41 = vmul.f32 %v681_v62, %v1461_v6  ;;  %v685_v26 = vmul.f32 %v678_v21, %v1467_v15 }
 0x2f4   :  { %v693_v29 = vpop.permute.xlu1 %692  ;;  %v631_v59 = vpop.permute.xlu0 %630 }
 0x2f5   :  { %v700_v35 = vsel %vm230_vm8, %v691_v48, %v693_v29  ;;  %v699_v10 = vsel %vm230_vm8, %v693_v29, %v695_v50 }
 0x2f6   :  { %v703_v61 = vmul.f32 %v700_v35, %v1456_v0  ;;  %v704_v20 = vmul.f32 %v699_v10, %v1477_v25 }
 0x2f8   :  { %v697_v9 = vpop.permute.xlu1 %696  ;;  %v835_v32 = vpack.c.bf16 %v703_v61, %v683_v38  ;;  %v635_v0 = vpop.permute.xlu0 %634  ;;  %v836_v60 = vpack.c.bf16 %v704_v20, %v684_v55 }
 0x2f9   :  { %v698_v4 = vsel %vm230_vm8, %v695_v50, %v697_v9  ;;  %v701_v40 = vsel %vm230_vm8, %v697_v9, %v691_v48  ;;  %v71_v48 = vld [vmem:[#allocation8] sm:$0xf] }
 0x2fa   :  { %v702_v46 = vmul.f32 %v701_v40, %v1474_v24  ;;  %v705_v52 = vmul.f32 %v698_v4, %v1484_v31  ;;  %877 = vmatprep.subr.bf16.mxu0 %v835_v32 }
 0x2fc   :  { %v834_v57 = vpack.c.bf16 %v702_v46, %v682_v41  ;;  %v633_v25 = vpop.permute.xlu1 %632  ;;  %v837_v39 = vpack.c.bf16 %v705_v52, %v685_v26  ;;  %v651_v43 = vpop.permute.xlu0 %650 }
 0x2fd   :  { %v640_v6 = vsel %vm104_vm9, %v631_v59, %v633_v25  ;;  %v639_v45 = vsel %vm104_vm9, %v633_v25, %v635_v0 }
 0x2fe   :  { %878 = vmatpush1.bf16.msra.mxu0 %v834_v57  ;;  %918 = vmatprep.subr.bf16.mxu1 %v837_v39  ;;  %v643_v31 = vmul.f32 %v640_v6, %v1502_v1  ;;  %v644_v33 = vmul.f32 %v639_v45, %v1514_v23 }
 0x2ff   :  { %919 = vmatpush1.bf16.msra.mxu1 %v836_v60 }
 0x300   :  { %v637_v44 = vpop.permute.xlu1 %636  ;;  %v655_v28 = vpop.permute.xlu0 %654 }
 0x301   :  { %v638_v47 = vsel %vm104_vm9, %v635_v0, %v637_v44  ;;  %v641_v51 = vsel %vm104_vm9, %v637_v44, %v631_v59 }
 0x302   :  { %v645_v13 = vmul.f32 %v638_v47, %v1517_v27 }
 0x304   :  { %v653_v15 = vpop.permute.xlu1 %652 }
 0x305   :  { %v660_v24 = vsel %vm146_vm10, %v651_v43, %v653_v15  ;;  %v659_v14 = vsel %vm146_vm10, %v653_v15, %v655_v28 }
 0x306   :  { %v663_v18 = vmul.f32 %v660_v24, %v1506_v16  ;;  %v664_v49 = vmul.f32 %v659_v14, %v1527_v36  ;;  %v642_v16 = vmul.f32 %v641_v51, %v1511_v22 }
 0x308   :  { %v657_v54 = vpop.permute.xlu1 %656  ;;  %v831_v56 = vpack.c.bf16 %v663_v18, %v643_v31  ;;  %v832_v36 = vpack.c.bf16 %v664_v49, %v644_v33 }
 0x309   :  { %v658_v1 = vsel %vm146_vm10, %v655_v28, %v657_v54  ;;  %v661_v8 = vsel %vm146_vm10, %v657_v54, %v651_v43 }
 0x30a   :  { %v662_v17 = vmul.f32 %v661_v8, %v1524_v34  ;;  %v665_v19 = vmul.f32 %v658_v1, %v1534_v42  ;;  %879 = vmatprep.subr.bf16.mxu0 %v831_v56 }
 0x30c   :  { %v830_v37 = vpack.c.bf16 %v662_v17, %v642_v16  ;;  %v833_v53 = vpack.c.bf16 %v665_v19, %v645_v13 }
 0x30e   :  { %880 = vmatpush1.bf16.msra.mxu0 %v830_v37  ;;  %920 = vmatprep.subr.bf16.mxu1 %v833_v53 }
 0x30f   :  { %921 = vmatpush1.bf16.msra.mxu1 %v832_v36 }
 0x311   :  { %1026 = vmatmul.mubr.msk.bf16.vlgmr.msra.gmra.mxu0 %vm492_vm11, %v71_v48 }
 0x312   :  { %1028 = vmatmul.mubr.msk.bf16.vlgmr.msra.gmra.mxu1 %vm492_vm11, %v71_v48 }
 0x3d1   :  { %v899_v11 = vpop.f32.mrf.mxu0 }
 0x3d2   :  { %v940_v22 = vpop.f32.mrf.mxu1  ;;  %v947_v58 = vmul.f32 %v899_v11, %v899_v11 }
 0x3d3   :  { %v901_v27 = vpop.f32.mrf.mxu0  ;;  %v965_v38 = vmul.f32 %v940_v22, %v940_v22 }
 0x3d4   :  { %v942_v34 = vpop.f32.mrf.mxu1  ;;  %v949_v30 = vadd.f32 %v901_v27, %v899_v11  ;;  %v948_v42 = vmul.f32 %v901_v27, %v901_v27 }
 0x3d5   :  { %v903_v12 = vpop.f32.mrf.mxu0  ;;  %v967_v50 = vadd.f32 %v942_v34, %v940_v22  ;;  %v966_v10 = vmul.f32 %v942_v34, %v942_v34 }
 0x3d6   :  { %v944_v23 = vpop.f32.mrf.mxu1  ;;  %950 = vadd.xlane.f32.xlu0 %v949_v30  ;;  %v952_v35 = vadd.f32 %v948_v42, %v947_v58 }
 0x3d7   :  { %968 = vadd.xlane.f32.xlu1 %v967_v50  ;;  %v904_v29 = vpop.f32.mrf.mxu0  ;;  %v970_v61 = vadd.f32 %v966_v10, %v965_v38 }
 0x3d8   :  { %v945_v59 = vpop.f32.mrf.mxu1 }
 0x3da   :  { %953 = vadd.xlane.f32.xlu0 %v952_v35 }
 0x3de   :  { %971 = vadd.xlane.f32.xlu0 %v970_v61 }
 0x45f   :  { %v951_v21 = vpop.xlane.xlu0 %950 }
 0x460   :  { %v955_v62 = vmul.f32 0.00390625, %v951_v21  ;;  %v969_v63 = vpop.xlane.xlu1 %968 }
 0x461   :  { %v973_v4 = vmul.f32 0.00390625, %v969_v63 }
 0x462   :  { %v957_v32 = vmul.f32 %v955_v62, %v955_v62  ;;  %v959_v57 = vsub.f32 %v899_v11, %v955_v62  ;;  %v960_v25 = vsub.f32 %v901_v27, %v955_v62 }
 0x463   :  { %v954_v9 = vpop.xlane.xlu0 %953  ;;  %v975_v26 = vmul.f32 %v973_v4, %v973_v4  ;;  %v977_v44 = vsub.f32 %v940_v22, %v973_v4  ;;  %v978_v6 = vsub.f32 %v942_v34, %v973_v4 }
 0x464   :  { %v956_v20 = vmul.f32 0.00390625, %v954_v9 }
 0x466   :  { %v958_v40 = vsub.f32 %v956_v20, %v957_v32 }
 0x467   :  { %v972_v0 = vpop.xlane.xlu0 %971 }
 0x468   :  { %v961_v41 = vadd.f32 1e-05, %v958_v40  ;;  %v974_v46 = vmul.f32 0.00390625, %v972_v0 }
 0x46a   :  { %1066 = vrsqrt.f32 %v961_v41  ;;  %v976_v52 = vsub.f32 %v974_v46, %v975_v26 }
 0x46c   :  { %v979_v55 = vadd.f32 1e-05, %v976_v52 }
 0x46e   :  { %1068 = vrsqrt.f32 %v979_v55 }
 0x477   :  { %v1067_v39 = vpop.eup %1066 }
 0x478   :  { %v963_v60 = vmul.f32 %v1067_v39, %v959_v57  ;;  %v964_v43 = vmul.f32 %v1067_v39, %v960_v25 }
 0x47a   :  { %v983_v15 = vadd.f32 %v963_v60, %v1247_v3  ;;  %v984_v28 = vadd.f32 %v964_v43, %v1271_v7 }
 0x47b   :  { %v1069_v24 = vpop.eup %1068 }
 0x47c   :  { %v981_v31 = vmul.f32 %v1069_v24, %v977_v44  ;;  %v982_v14 = vmul.f32 %v1069_v24, %v978_v6  ;;  %v987_v18 = vmax.f32 %v983_v15, 0.0  ;;  %v988_v47 = vmax.f32 %v984_v28, 0.0 }
 0x47e   :  { %v985_v51 = vadd.f32 %v981_v31, %v1243_v2  ;;  %v986_v45 = vadd.f32 %v982_v14, %v1259_v5  ;;  %v993_v54 = vcombine.low %v987_v18, %v988_v47 }
 0x480   :  { %v989_v56 = vmax.f32 %v985_v51, 0.0  ;;  %v990_v49 = vmax.f32 %v986_v45, 0.0  ;;  %995 = vst [vmem:[#allocation11] sm:$0xff] %v993_v54 }
 0x482   :  { %v998_v1 = vcombine.low %v989_v56, %v990_v49 }
 0x484   :  { %1001 = vst [vmem:[#allocation11 + $0x8] sm:$0xff] %v998_v1 }
 0x485   :  { %1161 = shalt.err (!%p1158_p10)
}
 0x486   :  { %1013 = dma.vmem_to_hbm [thread:$0]  %s1008_s18, 256, %s1746_s4, [#allocation5], %s1180_s23, %s1180_s23, %s1181_s24  }
 0x487   :  { %1176 = dma.done.wait [#allocation5], 256  }
 0x488   :  { %1177 = vsyncadd [#allocation5], 4294967040 }
 0x489   :  { %1017 = vsyncpa [#allocation4], 1 }
 0x48a   :  { %1018 = vsyncpa [#allocation7], 1 }
 0x48b   :  { %1019 = vsyncpa [#allocation10], 1 }
 0x48c   :  { %1020 = vsyncpa [#allocation5], 1 }

</bundles_post_ra>
